<compile_context>
chip_gen: v7x
topology: tpu7x:2x2x1
jax: 0.10.0
libtpu: 0.0.40
codegen_flags: <defaults>
</compile_context>

<pallas_src>
import jax
import jax.numpy as jnp
from jax import lax
from jax.experimental import pallas as pl
from jax.experimental.pallas import tpu as pltpu

_INV_SQRT2 = 0.7071067811865476
_LOW_BOUND = 1e-6


def _entropy_kernel(x_ref, p_ref, o_ref):
    """Elementwise mixture likelihood.

    x_ref: (rt, 128)       symbol values
    p_ref: (9, rt, 128)    [prob0, mean0, scale0, prob1, mean1, scale1,
                            prob2, mean2, scale2]
    o_ref: (rt, 128)       clamped likelihoods (f32)
    """
    x = x_ref[...].astype(jnp.float32)
    xp = x + 0.5
    xm = x - 0.5

    def plane(i):
        return p_ref[i].astype(jnp.float32)

    prob0, mean0, scale0 = plane(0), plane(1), plane(2)
    prob1, mean1, scale1 = plane(3), plane(4), plane(5)
    prob2, mean2, scale2 = plane(6), plane(7), plane(8)

    # Softmax over the 3 mixture logits.  den is in [1, 3], so EUP approx
    # reciprocal + one Newton step gives ~1e-7 relative error.
    m = jnp.maximum(jnp.maximum(prob0, prob1), prob2)
    e0 = jnp.exp(prob0 - m)
    e1 = jnp.exp(prob1 - m)
    e2 = jnp.exp(prob2 - m)
    den = e0 + e1 + e2
    r = pl.reciprocal(den, approx=True)
    inv_den = r * (2.0 - den * r)          # Newton refine

    def diff_cdf(mean, scale):
        # Low_bound forward: clamp(scale, min=1e-6).  1/s via EUP approx
        # reciprocal + one Newton step (~1e-7 relative error); where s sits
        # at the 1e-6 clamp the erf argument is deep in saturation so the
        # final likelihood error stays far below 1e-5.
        s = jnp.maximum(scale, _LOW_BOUND)
        rs = pl.reciprocal(s, approx=True)
        rs = rs * (2.0 - s * rs)
        a = _INV_SQRT2 * rs
        # cdf(xp) - cdf(xm) = 0.5 * (erf(hi) - erf(lo)); abs dropped since
        # s > 0 guarantees hi >= lo, 0.5 folded into the final mix.
        # NOTE: lax.erf lowers to a VPU polynomial and dominates per-element
        # VALU work; a shared custom polynomial for the xp/xm pair is the
        # next compute lever if v7x profiling confirms it.
        return lax.erf((xp - mean) * a) - lax.erf((xm - mean) * a)

    # Un-normalized mixture; inv_den and the 0.5 are factored out of the sum.
    num = (e0 * diff_cdf(mean0, scale0)
           + e1 * diff_cdf(mean1, scale1)
           + e2 * diff_cdf(mean2, scale2))
    mix = (0.5 * inv_den) * num

    # Low_bound on the mixture likelihood.  Keep this clamp: it also absorbs
    # any -1ulp-negative erf differences in deep saturation.
    o_ref[...] = jnp.maximum(mix, _LOW_BOUND).astype(o_ref.dtype)


def _ceil_div(a, b):
    return -(-a // b)


def _vmem_plan():
    """(scratch budget for double-buffered blocks, vmem_limit_bytes)."""
    try:
        cap = pltpu.get_tpu_info().vmem_capacity_bytes
    except Exception:
        cap = 64 * 1024 * 1024            # conservative (v7x-sized) fallback
    if cap >= 128 * 1024 * 1024:          # v5e / v6e: HBM-bound, go big
        return 56 * 1024 * 1024, 96 * 1024 * 1024
    return 24 * 1024 * 1024, 32 * 1024 * 1024   # v7x-sized parts


def _select_row_tile(rows, batch, vmem_budget_bytes, bytes_per_row):
    """Pick (row-tile rt, number of row tiles nt) for the grid."""
    # Largest row tile whose double-buffered footprint fits the budget.
    rt_cap = max(16, (vmem_budget_bytes // (2 * bytes_per_row)) // 16 * 16)
    nt = max(1, _ceil_div(rows, rt_cap))
    rt = _ceil_div(rows, nt)              # balance tiles (minimize ragged tail)
    if rt < rows:
        rt = _ceil_div(rt, 16) * 16       # dense (8,128)/(16,128) sublanes
    nt = _ceil_div(rows, rt)

    # v7x has 2 TensorCores: nudge to an even number of parallel grid steps
    # when cheaply possible (harmless on 1-TC parts).
    if (batch * nt) % 2 == 1 and rows > 16:
        rt2 = _ceil_div(_ceil_div(rows, nt + 1), 16) * 16
        nt2 = _ceil_div(rows, rt2)
        if nt2 == nt + 1:
            rt, nt = rt2, nt2
    return rt, nt


def distribution_for_entropy2(x, p_dec):
    """Pallas TPU implementation of Distribution_for_entropy2.forward.

    x:     (B, C, H, W) float32 (or bfloat16)
    p_dec: (B, 9, C, H, W) float32 (or bfloat16)
    returns (B, C, H, W) float32 likelihoods clamped at 1e-6.
    """
    B, C, H, W = x.shape
    assert p_dec.shape == (B, 9, C, H, W), p_dec.shape

    if x.dtype not in (jnp.float32, jnp.bfloat16):
        x = x.astype(jnp.float32)
    if p_dec.dtype not in (jnp.float32, jnp.bfloat16):
        p_dec = p_dec.astype(jnp.float32)

    # Flatten C into the spatial axis (contiguous, free reshapes — no HBM
    # transpose, no extra pass over p_dec).
    N = C * H * W
    rows = _ceil_div(N, 128)
    N_pad = rows * 128

    x2 = x.reshape(B, N)
    p2 = p_dec.reshape(B, 9, N)
    if N_pad != N:
        # TODO(synk): this pad costs an extra HBM pass over p_dec when
        # C*H*W is not 128-divisible; a full-dim tail-block path would avoid
        # it, but typical entropy-model shapes are 128-divisible.
        x2 = jnp.pad(x2, ((0, 0), (0, N_pad - N)))
        p2 = jnp.pad(p2, ((0, 0), (0, 0), (0, N_pad - N)))

    x3 = x2.reshape(B, rows, 128)
    p3 = p2.reshape(B, 9, rows, 128)

    vmem_budget, vmem_limit = _vmem_plan()
    bytes_per_row = 128 * (x3.dtype.itemsize + 9 * p3.dtype.itemsize + 4)
    rt, nt = _select_row_tile(rows, B, vmem_budget, bytes_per_row)

    n = B * rows * 128
    cost = pl.CostEstimate(
        flops=120 * n,              # 6x erf VPU polynomial dominates
        transcendentals=7 * n,      # 3 exp + 4 approx reciprocals
        bytes_accessed=(x3.size * x3.dtype.itemsize
                        + p3.size * p3.dtype.itemsize
                        + n * 4),
    )

    out3 = pl.pallas_call(
        _entropy_kernel,
        out_shape=jax.ShapeDtypeStruct((B, rows, 128), jnp.float32),
        grid_spec=pltpu.PrefetchScalarGridSpec(
            num_scalar_prefetch=0,
            grid=(B, nt),
            in_specs=[
                pl.BlockSpec((pl.Squeezed(), rt, 128),
                             lambda b, i: (b, i, 0)),
                pl.BlockSpec((pl.Squeezed(), 9, rt, 128),
                             lambda b, i: (b, 0, i, 0)),
            ],
            out_specs=pl.BlockSpec((pl.Squeezed(), rt, 128),
                                   lambda b, i: (b, i, 0)),
        ),
        compiler_params=pltpu.CompilerParams(
            dimension_semantics=("parallel", "parallel"),
            vmem_limit_bytes=vmem_limit,
        ),
        cost_estimate=cost,
    )(x3, p3)

    return out3.reshape(B, N_pad)[:, :N].reshape(B, C, H, W)


def _reference(x, p_dec):
    """Pure-JAX reference mirroring the PyTorch forward semantics."""
    chunks = [p_dec[:, i] for i in range(9)]
    prob0, mean0, scale0, prob1, mean1, scale1, prob2, mean2, scale2 = chunks
    probs = jax.nn.softmax(jnp.stack([prob0, prob1, prob2], axis=-1), axis=-1)
    s0 = jnp.maximum(scale0, _LOW_BOUND)
    s1 = jnp.maximum(scale1, _LOW_BOUND)
    s2 = jnp.maximum(scale2, _LOW_BOUND)

    def cdf(v, mu, sig):
        return 0.5 * (1.0 + lax.erf((v - mu) / (sig * jnp.sqrt(2.0))))

    def like(mu, sig):
        return jnp.abs(cdf(x + 0.5, mu, sig) - cdf(x - 0.5, mu, sig))

    mix = (probs[..., 0] * like(mean0, s0)
           + probs[..., 1] * like(mean1, s1)
           + probs[..., 2] * like(mean2, s2))
    return jnp.maximum(mix, _LOW_BOUND)


if __name__ == "__main__":
    B, C, H, W = 2, 4, 16, 16
    key = jax.random.PRNGKey(0)
    kx, kp = jax.random.split(key)

    # quantized-symbol-like inputs and raw (unconstrained) decoded parameters
    x = jnp.round(jax.random.normal(kx, (B, C, H, W), dtype=jnp.float32) * 3.0)
    p_dec = jax.random.normal(kp, (B, 9, C, H, W), dtype=jnp.float32)
    # make the scale channels (indices 2, 5, 8 along dim 1) positive-ish but
    # keep some small values to exercise the Low_bound clamp
    p_dec = p_dec.at[:, 2].set(jnp.abs(p_dec[:, 2]) * 0.5)
    p_dec = p_dec.at[:, 5].set(jnp.abs(p_dec[:, 5]) * 0.5)
    p_dec = p_dec.at[:, 8].set(jnp.abs(p_dec[:, 8]) * 0.5)
    # exercise the scale == 1e-6 clamp path explicitly (approx-reciprocal case)
    p_dec = p_dec.at[0, 2, 0, 0, 0].set(0.0)
    p_dec = p_dec.at[0, 5, 0, 0, 1].set(1e-7)

    out = jax.block_until_ready(distribution_for_entropy2(x, p_dec))
    ref = jax.block_until_ready(_reference(x, p_dec))

    assert out.shape == (B, C, H, W)
    max_err = float(jnp.max(jnp.abs(out - ref)))
    assert jnp.allclose(out, ref, atol=1e-5, rtol=1e-5), max_err

    # TODO(synk): Low_bound's custom straight-through backward is not
    # implemented (forward-only kernel).
    print("KERNEL_OK")
</pallas_src>

<mosaic_0001>
module attributes {stable_mosaic.version = 11 : i64} {
  func.func @_entropy_kernel(%arg0: i32, %arg1: i32, %arg2: memref<1x8x128xf32, #tpu.memory_space<vmem>>, %arg3: memref<1x9x8x128xf32, #tpu.memory_space<vmem>>, %arg4: memref<1x8x128xf32, #tpu.memory_space<vmem>>) attributes {dimension_semantics = [#tpu.dimension_semantics<parallel>, #tpu.dimension_semantics<parallel>], iteration_bounds = array<i64: 2, 1>, scalar_prefetch = 0 : i64, scratch_operands = 0 : i64, tpu.core_type = #tpu.core_type<tc>, window_params = [{transform_indices = @transform_0, window_bounds = array<i64: 1, 8, 128>}, {transform_indices = @transform_1, window_bounds = array<i64: 1, 9, 8, 128>}, {transform_indices = @transform_2, window_bounds = array<i64: 1, 8, 128>}]} {
    %c0 = arith.constant 0 : index
    %c0_0 = arith.constant 0 : index
    %c0_1 = arith.constant 0 : index
    %0 = vector.load %arg2[%c0, %c0_0, %c0_1] : memref<1x8x128xf32, #tpu.memory_space<vmem>>, vector<1x8x128xf32>
    %1 = vector.shape_cast %0 : vector<1x8x128xf32> to vector<8x128xf32>
    %cst = arith.constant 5.000000e-01 : f32
    %2 = vector.broadcast %cst : f32 to vector<8x128xf32>
    %3 = arith.addf %1, %2 : vector<8x128xf32>
    %cst_2 = arith.constant 5.000000e-01 : f32
    %4 = vector.broadcast %cst_2 : f32 to vector<8x128xf32>
    %5 = arith.subf %1, %4 : vector<8x128xf32>
    %c0_3 = arith.constant 0 : index
    %c0_4 = arith.constant 0 : index
    %c0_5 = arith.constant 0 : index
    %c0_6 = arith.constant 0 : index
    %6 = vector.load %arg3[%c0_3, %c0_4, %c0_5, %c0_6] : memref<1x9x8x128xf32, #tpu.memory_space<vmem>>, vector<1x1x8x128xf32>
    %7 = vector.shape_cast %6 : vector<1x1x8x128xf32> to vector<8x128xf32>
    %c0_7 = arith.constant 0 : index
    %c1 = arith.constant 1 : index
    %c0_8 = arith.constant 0 : index
    %c0_9 = arith.constant 0 : index
    %8 = vector.load %arg3[%c0_7, %c1, %c0_8, %c0_9] : memref<1x9x8x128xf32, #tpu.memory_space<vmem>>, vector<1x1x8x128xf32>
    %9 = vector.shape_cast %8 : vector<1x1x8x128xf32> to vector<8x128xf32>
    %c0_10 = arith.constant 0 : index
    %c2 = arith.constant 2 : index
    %c0_11 = arith.constant 0 : index
    %c0_12 = arith.constant 0 : index
    %10 = vector.load %arg3[%c0_10, %c2, %c0_11, %c0_12] : memref<1x9x8x128xf32, #tpu.memory_space<vmem>>, vector<1x1x8x128xf32>
    %11 = vector.shape_cast %10 : vector<1x1x8x128xf32> to vector<8x128xf32>
    %c0_13 = arith.constant 0 : index
    %c3 = arith.constant 3 : index
    %c0_14 = arith.constant 0 : index
    %c0_15 = arith.constant 0 : index
    %12 = vector.load %arg3[%c0_13, %c3, %c0_14, %c0_15] : memref<1x9x8x128xf32, #tpu.memory_space<vmem>>, vector<1x1x8x128xf32>
    %13 = vector.shape_cast %12 : vector<1x1x8x128xf32> to vector<8x128xf32>
    %c0_16 = arith.constant 0 : index
    %c4 = arith.constant 4 : index
    %c0_17 = arith.constant 0 : index
    %c0_18 = arith.constant 0 : index
    %14 = vector.load %arg3[%c0_16, %c4, %c0_17, %c0_18] : memref<1x9x8x128xf32, #tpu.memory_space<vmem>>, vector<1x1x8x128xf32>
    %15 = vector.shape_cast %14 : vector<1x1x8x128xf32> to vector<8x128xf32>
    %c0_19 = arith.constant 0 : index
    %c5 = arith.constant 5 : index
    %c0_20 = arith.constant 0 : index
    %c0_21 = arith.constant 0 : index
    %16 = vector.load %arg3[%c0_19, %c5, %c0_20, %c0_21] : memref<1x9x8x128xf32, #tpu.memory_space<vmem>>, vector<1x1x8x128xf32>
    %17 = vector.shape_cast %16 : vector<1x1x8x128xf32> to vector<8x128xf32>
    %c0_22 = arith.constant 0 : index
    %c6 = arith.constant 6 : index
    %c0_23 = arith.constant 0 : index
    %c0_24 = arith.constant 0 : index
    %18 = vector.load %arg3[%c0_22, %c6, %c0_23, %c0_24] : memref<1x9x8x128xf32, #tpu.memory_space<vmem>>, vector<1x1x8x128xf32>
    %19 = vector.shape_cast %18 : vector<1x1x8x128xf32> to vector<8x128xf32>
    %c0_25 = arith.constant 0 : index
    %c7 = arith.constant 7 : index
    %c0_26 = arith.constant 0 : index
    %c0_27 = arith.constant 0 : index
    %20 = vector.load %arg3[%c0_25, %c7, %c0_26, %c0_27] : memref<1x9x8x128xf32, #tpu.memory_space<vmem>>, vector<1x1x8x128xf32>
    %21 = vector.shape_cast %20 : vector<1x1x8x128xf32> to vector<8x128xf32>
    %c0_28 = arith.constant 0 : index
    %c8 = arith.constant 8 : index
    %c0_29 = arith.constant 0 : index
    %c0_30 = arith.constant 0 : index
    %22 = vector.load %arg3[%c0_28, %c8, %c0_29, %c0_30] : memref<1x9x8x128xf32, #tpu.memory_space<vmem>>, vector<1x1x8x128xf32>
    %23 = vector.shape_cast %22 : vector<1x1x8x128xf32> to vector<8x128xf32>
    %24 = arith.maximumf %7, %13 : vector<8x128xf32>
    %25 = arith.maximumf %24, %19 : vector<8x128xf32>
    %26 = arith.subf %7, %25 : vector<8x128xf32>
    %27 = math.exp %26 : vector<8x128xf32>
    %28 = arith.subf %13, %25 : vector<8x128xf32>
    %29 = math.exp %28 : vector<8x128xf32>
    %30 = arith.subf %19, %25 : vector<8x128xf32>
    %31 = math.exp %30 : vector<8x128xf32>
    %32 = arith.addf %27, %29 : vector<8x128xf32>
    %33 = arith.addf %32, %31 : vector<8x128xf32>
    %34 = tpu.reciprocal %33 {approx = true} : vector<8x128xf32> -> vector<8x128xf32>
    %35 = arith.mulf %33, %34 : vector<8x128xf32>
    %cst_31 = arith.constant 2.000000e+00 : f32
    %36 = vector.broadcast %cst_31 : f32 to vector<8x128xf32>
    %37 = arith.subf %36, %35 : vector<8x128xf32>
    %38 = arith.mulf %34, %37 : vector<8x128xf32>
    %cst_32 = arith.constant 9.99999997E-7 : f32
    %39 = vector.broadcast %cst_32 : f32 to vector<8x128xf32>
    %40 = arith.maximumf %11, %39 : vector<8x128xf32>
    %41 = tpu.reciprocal %40 {approx = true} : vector<8x128xf32> -> vector<8x128xf32>
    %42 = arith.mulf %40, %41 : vector<8x128xf32>
    %cst_33 = arith.constant 2.000000e+00 : f32
    %43 = vector.broadcast %cst_33 : f32 to vector<8x128xf32>
    %44 = arith.subf %43, %42 : vector<8x128xf32>
    %45 = arith.mulf %41, %44 : vector<8x128xf32>
    %cst_34 = arith.constant 0.707106769 : f32
    %46 = vector.broadcast %cst_34 : f32 to vector<8x128xf32>
    %47 = arith.mulf %46, %45 : vector<8x128xf32>
    %48 = arith.subf %3, %9 : vector<8x128xf32>
    %49 = arith.mulf %48, %47 : vector<8x128xf32>
    %50 = math.erf %49 : vector<8x128xf32>
    %51 = arith.subf %5, %9 : vector<8x128xf32>
    %52 = arith.mulf %51, %47 : vector<8x128xf32>
    %53 = math.erf %52 : vector<8x128xf32>
    %54 = arith.subf %50, %53 : vector<8x128xf32>
    %55 = arith.mulf %27, %54 : vector<8x128xf32>
    %cst_35 = arith.constant 9.99999997E-7 : f32
    %56 = vector.broadcast %cst_35 : f32 to vector<8x128xf32>
    %57 = arith.maximumf %17, %56 : vector<8x128xf32>
    %58 = tpu.reciprocal %57 {approx = true} : vector<8x128xf32> -> vector<8x128xf32>
    %59 = arith.mulf %57, %58 : vector<8x128xf32>
    %cst_36 = arith.constant 2.000000e+00 : f32
    %60 = vector.broadcast %cst_36 : f32 to vector<8x128xf32>
    %61 = arith.subf %60, %59 : vector<8x128xf32>
    %62 = arith.mulf %58, %61 : vector<8x128xf32>
    %cst_37 = arith.constant 0.707106769 : f32
    %63 = vector.broadcast %cst_37 : f32 to vector<8x128xf32>
    %64 = arith.mulf %63, %62 : vector<8x128xf32>
    %65 = arith.subf %3, %15 : vector<8x128xf32>
    %66 = arith.mulf %65, %64 : vector<8x128xf32>
    %67 = math.erf %66 : vector<8x128xf32>
    %68 = arith.subf %5, %15 : vector<8x128xf32>
    %69 = arith.mulf %68, %64 : vector<8x128xf32>
    %70 = math.erf %69 : vector<8x128xf32>
    %71 = arith.subf %67, %70 : vector<8x128xf32>
    %72 = arith.mulf %29, %71 : vector<8x128xf32>
    %73 = arith.addf %55, %72 : vector<8x128xf32>
    %cst_38 = arith.constant 9.99999997E-7 : f32
    %74 = vector.broadcast %cst_38 : f32 to vector<8x128xf32>
    %75 = arith.maximumf %23, %74 : vector<8x128xf32>
    %76 = tpu.reciprocal %75 {approx = true} : vector<8x128xf32> -> vector<8x128xf32>
    %77 = arith.mulf %75, %76 : vector<8x128xf32>
    %cst_39 = arith.constant 2.000000e+00 : f32
    %78 = vector.broadcast %cst_39 : f32 to vector<8x128xf32>
    %79 = arith.subf %78, %77 : vector<8x128xf32>
    %80 = arith.mulf %76, %79 : vector<8x128xf32>
    %cst_40 = arith.constant 0.707106769 : f32
    %81 = vector.broadcast %cst_40 : f32 to vector<8x128xf32>
    %82 = arith.mulf %81, %80 : vector<8x128xf32>
    %83 = arith.subf %3, %21 : vector<8x128xf32>
    %84 = arith.mulf %83, %82 : vector<8x128xf32>
    %85 = math.erf %84 : vector<8x128xf32>
    %86 = arith.subf %5, %21 : vector<8x128xf32>
    %87 = arith.mulf %86, %82 : vector<8x128xf32>
    %88 = math.erf %87 : vector<8x128xf32>
    %89 = arith.subf %85, %88 : vector<8x128xf32>
    %90 = arith.mulf %31, %89 : vector<8x128xf32>
    %91 = arith.addf %73, %90 : vector<8x128xf32>
    %cst_41 = arith.constant 5.000000e-01 : f32
    %92 = vector.broadcast %cst_41 : f32 to vector<8x128xf32>
    %93 = arith.mulf %92, %38 : vector<8x128xf32>
    %94 = arith.mulf %93, %91 : vector<8x128xf32>
    %cst_42 = arith.constant 9.99999997E-7 : f32
    %95 = vector.broadcast %cst_42 : f32 to vector<8x128xf32>
    %96 = arith.maximumf %94, %95 : vector<8x128xf32>
    %c0_43 = arith.constant 0 : index
    %c0_44 = arith.constant 0 : index
    %c0_45 = arith.constant 0 : index
    %97 = vector.load %arg4[%c0_43, %c0_44, %c0_45] : memref<1x8x128xf32, #tpu.memory_space<vmem>>, vector<1x8x128xf32>
    %98 = vector.shape_cast %97 : vector<1x8x128xf32> to vector<8x128xf32>
    %99 = vector.shape_cast %96 : vector<8x128xf32> to vector<1x8x128xf32>
    tpu.vector_store %arg4[%c0_43, %c0_44, %c0_45], %99 {strides = array<i32>} : memref<1x8x128xf32, #tpu.memory_space<vmem>>, vector<1x8x128xf32>,
    return
  }
  func.func @transform_0(%arg0: i32, %arg1: i32) -> (i32, i32, i32) {
    %c0_i32 = arith.constant 0 : i32
    %c0_i32_0 = arith.constant 0 : i32
    return %arg0, %arg1, %c0_i32 : i32, i32, i32
  }
  func.func @transform_1(%arg0: i32, %arg1: i32) -> (i32, i32, i32, i32) {
    %c0_i32 = arith.constant 0 : i32
    %c0_i32_0 = arith.constant 0 : i32
    %c0_i32_1 = arith.constant 0 : i32
    return %arg0, %c0_i32, %arg1, %c0_i32_0 : i32, i32, i32, i32
  }
  func.func @transform_2(%arg0: i32, %arg1: i32) -> (i32, i32, i32) {
    %c0_i32 = arith.constant 0 : i32
    %c0_i32_0 = arith.constant 0 : i32
    return %arg0, %arg1, %c0_i32 : i32, i32, i32
  }
}

</mosaic_0001>

<bundles_post_ra>
// kernel: tpu_custom_call.1
= control target key start
LH: loop header
LB: loop body
LE: loop exit
PB: predicated region body
PF: predicated region fallthrough
CT: control target
= control target key end

     0   :  { %7 = vsyncpa [#allocation3], 0  ;;  %s951_s0 = inlined_call_operand.hbm [shape: f32[2,8,128], index: 0, kind: input, shape index: {}]   ;;  %s952_s1 = inlined_call_operand.hbm [shape: f32[2,9,8,128], index: 1, kind: input, shape index: {}]   ;;  %s953_s2 = inlined_call_operand.hbm [shape: f32[2,8,128], index: 2, kind: output, shape index: {}]  }
   0x1   :  { %9 = vsyncpa [#allocation3 + $0x1], 0 }
   0x2   :  { %10 = vsyncpa [#allocation6], 0 }
   0x3   :  { %12 = vsyncpa [#allocation6 + $0x1], 0 }
   0x4   :  { %13 = vsyncpa [#allocation4], 0 }
   0x5   :  { %15 = vsyncpa [#allocation4 + $0x1], 0  ;;  %s713_s9 = smov 0   ;;  %s715_s10 = smov 0  }
   0x6   :  { %s717_s11 = smov 0   ;;  %s719_s12 = smov 0  }
   0x7   :  { %s721_s13 = smov 0   ;;  %s723_s14 = smov 0  }
   0x8 LB: > { %s424_s15 = sadd.s32 4294967295, %s691_s14   ;;  %s425_s16 = sadd.s32 4294967294, %s691_s14   ;;  %s691_s14 = sphi %s723_s14, %s21_s14   ;;  %s687_s13 = sphi %s721_s13, %s972_s13   ;;  %s683_s12 = sphi %s719_s12, %s971_s12   ;;  %s679_s11 = sphi %s717_s11, %s970_s11   ;;  %s675_s10 = sphi %s715_s10, %s969_s10   ;;  %s671_s9 = sphi %s713_s9, %s968_s9  }
   0x9   : > { %s33_s17 = sadd.s32 1, %s687_s13  ;;  %s42_s18 = sadd.s32 1, %s679_s11 }
   0xa   : > { %p35_p0 = scmp.ge.s32.totalorder %s33_s17, 2  ;;  %p49_p1 = scmp.ne.s32.totalorder %s679_s11, %s675_s10 }
   0xb   : > { %p50_p2 = scmp.eq.s32.totalorder %s691_s14, 0  ;;  %p55_p3 = scmp.ne.s32.totalorder %s675_s10, %s671_s9 }
   0xc   : > { %s974_s17 = smov (%p35_p0, %s33_s17), 0  ;;  %p56_p5 = scmp.eq.s32.totalorder %s424_s15, 0 }
   0xd   : > { %p754_p4 = por %p50_p2, %p49_p1  ;;  %s37_s20 = ssub.s32 %s687_s13, %s974_s17 }
   0xe   : > { %p109_p6 = scmp.eq.s32.totalorder %s424_s15, 1  ;;  %p40_p7 = scmp.eq.s32.totalorder %s37_s20, 0 }
   0xf   : > { %p760_p8 = por %p56_p5, %p55_p3  ;;  %p115_p10 = scmp.eq.s32.totalorder %s425_s16, 1 }
  0x10   : > { %p764_p9 = por %p109_p6, %p49_p1  ;;  %p467_p13 = scmp.lt.s32.totalorder %s691_s14, 2 }
  0x11   : > { %s957_s21 = scalar_select %p760_p8, 1, 0 }
  0x12   : > { %s958_s22 = scalar_select %p764_p9, 1, 0 }
  0x13   : > { %s769_s23 = scalar_select %p40_p7, %s679_s11, %s42_s18  }
  0x14   : > { %p771_p11 = por %p115_p10, %p55_p3  ;;  %s778_s25 = sand.u32 1, %s679_s11  }
  0x15   : > { %s428_s26 = sshll.u32 %s778_s25, 3  ;;  %s429_s27 = sshll.u32 %s687_s13, 7 }
  0x16   : > { %s959_s24 = scalar_select %p771_p11, 1, 0 }
  0x17   : > { %s785_s30 = scalar_lea.hbm %s951_s0, %s429_s27  ;;  %s139_s3 = scalar_lea.vmem [#allocation2], %s428_s26 }
  0x18   : > { %s147_s4 = sshll.u32 %s139_s3, 4  ;;  %p791_p0 = pnand %p467_p13, %p754_p4  ;;  %s787_s4 = int_to_ptr.vmem [resolvable:$true] %s147_s4 }
  0x19   : > { %s136_s6 = scalar_lea.sflag [#allocation3], %s778_s25  ;;  %s545_s7 = scalar_lea.hbm %s785_s30, 128 }
  0x1a   : > { %p546_p3 = scmp.ne.s32.totalorder %s785_s30, %s545_s7  ;;  %p547_p5 = pneg %p791_p0 }
  0x1b   : > { %s550_s16 = scalar_lea.hbm %s951_s0, 256  ;;  %p551_p4 = scmp.lt.u32.totalorder %s785_s30, %s951_s0 }
  0x1c   : > { %p548_p6 = pnand %p547_p5, %p546_p3  ;;  %p552_p10 = scmp.lt.u32.totalorder %s550_s16, %s545_s7 }
  0x1d   : > { %p554_p12 = scmp.lt.u32.totalorder %s545_s7, %s785_s30 }
  0x1e   : > { %p549_p7 = pneg %p548_p6  ;;  %p553_p13 = por %p552_p10, %p551_p4 }
  0x20   : > { %p555_p1 = por %p554_p12, %p553_p13 }
  0x22   : > { %p556_p2 = pnand %p555_p1, %p549_p7 }
  0x24   : > { %559 = shalt.err (!%p556_p2)
}
  0x25   : > { %s560_s20 = scalar_lea.vmem %s787_s4, 128  ;;  %s693_s26 = smov [#allocation2]  }
  0x26   : > { %p561_p3 = scmp.ne.s32.totalorder %s787_s4, %s560_s20  ;;  %s565_s27 = sshll.u32 %s693_s26, 4  ;;  %s566_s27 = int_to_ptr.vmem [resolvable:$false] %s565_s27 }
  0x27   : > { %s567_s28 = scalar_lea.vmem %s566_s27, 256  ;;  %p568_p9 = scmp.lt.s32.totalorder %s787_s4, %s566_s27 }
  0x28   : > { %p563_p6 = pnand %p561_p3, %p547_p5  ;;  %p569_p4 = scmp.lt.s32.totalorder %s567_s28, %s560_s20 }
  0x2a   : > { %p564_p11 = pneg %p563_p6  ;;  %p570_p10 = por %p569_p4, %p568_p9 }
  0x2c   : > { %p571_p12 = pnand %p570_p10, %p564_p11 }
  0x2e   : > { %574 = shalt.err (!%p571_p12)
}
  0x2f   : > { %459 = dma.hbm_to_vmem [thread:$0]  (!%p791_p0), %s785_s30, 128, %s787_s4, %s136_s6  }
  0x30   : > { %p961_p1 = scmp.lt.s32.totalorder %s691_s14, 3  ;;  %p962_p2 = scmp.ge.s32.totalorder %s691_s14, 1 }
  0x31   : > { %s447_s3 = smul.u32 72, %s778_s25  ;;  %s155_s30 = scalar_lea.sflag [#allocation6], %s778_s25 }
  0x32   : > { %p827_p7 = pnand %p962_p2, %p961_p1  ;;  %s448_s7 = smul.u32 1152, %s687_s13 }
  0x33   : > { %s158_s18 = scalar_lea.vmem [#allocation5], %s447_s3  ;;  %s580_s26 = scalar_lea.hbm %s952_s1, 2304 }
  0x34   : > { %s836_s16 = scalar_lea.hbm %s952_s1, %s448_s7  ;;  %s166_s19 = sshll.u32 %s158_s18, 4  ;;  %s838_s19 = int_to_ptr.vmem [resolvable:$true] %s166_s19 }
  0x35   : > { %s575_s4 = scalar_lea.hbm %s836_s16, 1152  ;;  %p581_p3 = scmp.lt.u32.totalorder %s836_s16, %s952_s1 }
  0x36   : > { %p576_p9 = scmp.ne.s32.totalorder %s836_s16, %s575_s4  ;;  %p582_p6 = scmp.lt.u32.totalorder %s580_s26, %s575_s4 }
  0x37   : > { %p584_p10 = scmp.lt.u32.totalorder %s575_s4, %s836_s16 }
  0x38   : > { %p578_p11 = pnand %p576_p9, %p547_p5  ;;  %p583_p4 = por %p582_p6, %p581_p3 }
  0x3a   : > { %p579_p13 = pneg %p578_p11  ;;  %p585_p12 = por %p584_p10, %p583_p4 }
  0x3c   : > { %p586_p1 = pnand %p585_p12, %p579_p13 }
  0x3e   : > { %589 = shalt.err (!%p586_p1)
}
  0x3f   : > { %s590_s3 = scalar_lea.vmem %s838_s19, 1152  ;;  %s694_s7 = smov [#allocation5]  }
  0x40   : > { %p591_p2 = scmp.ne.s32.totalorder %s838_s19, %s590_s3  ;;  %s595_s8 = sshll.u32 %s694_s7, 4  ;;  %s596_s8 = int_to_ptr.vmem [resolvable:$false] %s595_s8 }
  0x41   : > { %s597_s15 = scalar_lea.vmem %s596_s8, 2304  ;;  %p598_p8 = scmp.lt.s32.totalorder %s838_s19, %s596_s8 }
  0x42   : > { %p593_p9 = pnand %p591_p2, %p547_p5  ;;  %p599_p3 = scmp.lt.s32.totalorder %s597_s15, %s590_s3 }
  0x44   : > { %p594_p11 = pneg %p593_p9  ;;  %p600_p6 = por %p599_p3, %p598_p8 }
  0x46   : > { %p601_p4 = pnand %p600_p6, %p594_p11 }
  0x48   : > { %604 = shalt.err (!%p601_p4)
}
  0x49   : > { %s695_s18 = smov 128   ;;  %s696_s4 = smov 8  }
  0x4a   : > { %462 = dma.hbm_to_vmem [thread:$0]  (!%p791_p0), %s836_s16, 1152, %s838_s19, %s155_s30, %s695_s18, %s695_s18, %s696_s4  }
  0x4b   : > { %178 = sbr.rel (%p827_p7) target bundleno = 153 (0x99), region = 28  ;;  %s869_s6 = sand.u32 (!%p827_p7), 1, %s675_s10  }
  0x4c   : > { %s432_s20 = sshll.u32 (!%p827_p7), %s869_s6, 3  ;;  %s181_s26 = scalar_lea.sflag (!%p827_p7), [#allocation3], %s869_s6 }
  0x4d   : > { %s184_s27 = scalar_lea.vmem (!%p827_p7), [#allocation2], %s432_s20  ;;  %p964_p8 = scmp.ne.s32.totalorder (!%p827_p7), %s957_s21, 0 }
  0x52   : > { %658 = dma.done.wait (%p964_p8), %s181_s26, 128  }
  0x53   : > { %660 = vsyncadd (%p964_p8), %s181_s26, 4294967168  ;;  %s449_s25 = smul.u32 72, %s869_s6  ;;  %s190_s5 = scalar_lea.sflag [#allocation6], %s869_s6 }
  0x55   : > { %s881_s29 = scalar_lea.vmem [#allocation5], %s449_s25 }
  0x56   : > { %662 = dma.done.wait (%p964_p8), %s190_s5, 1152  }
  0x57   : > { %664 = vsyncadd (%p964_p8), %s190_s5, 4294966144  ;;  %v222_v0 = vld [vmem:[%s881_s29] sm:$0xff]  ;;  %v436_v1 = vld [vmem:[%s881_s29 + $0x10] sm:$0xff]  ;;  %s218_s21 = scalar_lea.vmem [#allocation7], %s432_s20  ;;  %s444_s19 = sshll.u32 %s683_s12, 7 }
  0x58   : > { %v437_v2 = vld [vmem:[%s881_s29 + $0x18] sm:$0xff]  ;;  %v439_v3 = vld [vmem:[%s881_s29 + $0x28] sm:$0xff]  ;;  %v440_v4 = vld [vmem:[%s881_s29 + $0x30] sm:$0xff]  ;;  %v256_v6 = vmax.f32 %v436_v1, 1e-06  ;;  %s319_s16 = sshll.u32 %s218_s21, 4  ;;  %s904_s3 = scalar_lea.hbm %s953_s2, %s444_s19  ;;  %s899_s16 = int_to_ptr.vmem [resolvable:$true] %s319_s16 }
  0x59   : > { %v239_v5 = vmax.f32 %v222_v0, %v437_v2  ;;  %v442_v7 = vld [vmem:[%s881_s29 + $0x40] sm:$0xff]  ;;  %v270_v8 = vmax.f32 %v439_v3, 1e-06  ;;  %v219_v17 = vld [vmem:[%s184_s27] sm:$0xff]  ;;  %v435_v24 = vld [vmem:[%s881_s29 + $0x8] sm:$0xff]  ;;  %s305_s7 = scalar_lea.sflag [#allocation4], %s869_s6 }
  0x5a   : > { %519 = vrcp.f32 %v256_v6  ;;  %v285_v10 = vmax.f32 %v442_v7, 1e-06  ;;  %v220_v20 = vadd.f32 0.5, %v219_v17  ;;  %v434_v21 = vadd.f32 -0.5, %v219_v17  ;;  %v438_v26 = vld [vmem:[%s881_s29 + $0x20] sm:$0xff]  ;;  %v441_v30 = vld [vmem:[%s881_s29 + $0x38] sm:$0xff] }
  0x5b   : > { %v240_v9 = vmax.f32 %v239_v5, %v440_v4  ;;  %521 = vrcp.f32 %v270_v8  ;;  %s605_s8 = scalar_lea.vmem %s899_s16, 128  ;;  %p965_p5 = scmp.ne.s32.totalorder %s958_s22, 0 }
  0x5c   : > { %523 = vrcp.f32 %v285_v10  ;;  %v262_v32 = vsub.f32 %v220_v20, %v435_v24  ;;  %v265_v33 = vsub.f32 %v434_v21, %v435_v24  ;;  %v276_v37 = vsub.f32 %v220_v20, %v438_v26  ;;  %p606_p0 = scmp.ne.s32.totalorder %s899_s16, %s605_s8  ;;  %s697_s12 = smov [#allocation7]  }
  0x5d   : > { %v241_v11 = vsub.f32 %v222_v0, %v240_v9  ;;  %v244_v12 = vsub.f32 %v437_v2, %v240_v9  ;;  %v247_v13 = vsub.f32 %v440_v4, %v240_v9  ;;  %v279_v40 = vsub.f32 %v434_v21, %v438_v26  ;;  %s609_s15 = sshll.u32 %s697_s12, 4  ;;  %s610_s15 = int_to_ptr.vmem [resolvable:$false] %s609_s15 }
  0x5e   : > { %v291_v45 = vsub.f32 %v220_v20, %v441_v30  ;;  %v294_v49 = vsub.f32 %v434_v21, %v441_v30  ;;  %p607_p7 = pnand %p606_p0, %p965_p5  ;;  %s611_s18 = scalar_lea.vmem %s610_s15, 256 }
  0x5f   : > { %v242_v14 = vmul.f32 1.442695, %v241_v11  ;;  %v245_v15 = vmul.f32 1.442695, %v244_v12  ;;  %v248_v16 = vmul.f32 1.442695, %v247_v13  ;;  %p612_p10 = scmp.lt.s32.totalorder %s899_s16, %s610_s15  ;;  %p613_p12 = scmp.lt.s32.totalorder %s611_s18, %s605_s8 }
  0x60   : > { %p608_p13 = pneg %p607_p7 }
  0x61   : > { %525 = vpow2.f32 %v242_v14  ;;  %p614_p1 = por %p613_p12, %p612_p10 }
  0x62   : > { %527 = vpow2.f32 %v245_v15 }
  0x63   : > { %529 = vpow2.f32 %v248_v16  ;;  %p615_p2 = pnand %p614_p1, %p608_p13 }
  0x64   : > { %v520_v18 = vpop.eup %519 }
  0x65   : > { %v522_v19 = vpop.eup %521  ;;  %v258_v22 = vmul.f32 %v520_v18, %v256_v6 }
  0x66   : > { %v524_v23 = vpop.eup %523  ;;  %v272_v25 = vmul.f32 %v522_v19, %v270_v8 }
  0x67   : > { %v259_v27 = vsub.f32 2.0, %v258_v22  ;;  %v287_v28 = vmul.f32 %v524_v23, %v285_v10 }
  0x68   : > { %v273_v29 = vsub.f32 2.0, %v272_v25 }
  0x69   : > { %v260_v31 = vmul.f32 %v520_v18, %v259_v27  ;;  %v288_v34 = vsub.f32 2.0, %v287_v28 }
  0x6a   : > { %v274_v36 = vmul.f32 %v522_v19, %v273_v29 }
  0x6b   : > { %v526_v35 = vpop.eup %525  ;;  %v261_v39 = vmul.f32 0.70710677, %v260_v31  ;;  %v289_v41 = vmul.f32 %v524_v23, %v288_v34 }
  0x6c   : > { %v528_v38 = vpop.eup %527  ;;  %v275_v44 = vmul.f32 0.70710677, %v274_v36 }
  0x6d   : > { %v530_v42 = vpop.eup %529  ;;  %v250_v43 = vadd.f32 %v528_v38, %v526_v35  ;;  %v263_v46 = vmul.f32 %v262_v32, %v261_v39  ;;  %v266_v47 = vmul.f32 %v265_v33, %v261_v39  ;;  %v290_v48 = vmul.f32 0.70710677, %v289_v41 }
  0x6e   : > { %v277_v51 = vmul.f32 %v276_v37, %v275_v44  ;;  %v280_v52 = vmul.f32 %v279_v40, %v275_v44 }
  0x6f   : > { %v251_v50 = vadd.f32 %v530_v42, %v250_v43  ;;  %531 = verf.f32 %v263_v46  ;;  %v292_v53 = vmul.f32 %v291_v45, %v290_v48  ;;  %v295_v54 = vmul.f32 %v294_v49, %v290_v48 }
  0x71   : > { %533 = vrcp.f32 %v251_v50 }
  0x72   : > { %535 = verf.f32 %v266_v47 }
  0x73   : > { %537 = verf.f32 %v277_v51 }
  0x74   : > { %539 = verf.f32 %v280_v52 }
  0x75   : > { %541 = verf.f32 %v292_v53 }
  0x76   : > { %543 = verf.f32 %v295_v54 }
  0x79   : > { %v532_v55 = vpop.eup %531 }
  0x7b   : > { %v534_v56 = vpop.eup %533 }
  0x7c   : > { %v536_v57 = vpop.eup %535  ;;  %v253_v58 = vmul.f32 %v534_v56, %v251_v50 }
  0x7d   : > { %v538_v59 = vpop.eup %537  ;;  %v268_v60 = vsub.f32 %v532_v55, %v536_v57 }
  0x7e   : > { %v540_v61 = vpop.eup %539  ;;  %v254_v62 = vsub.f32 2.0, %v253_v58 }
  0x7f   : > { %v542_v63 = vpop.eup %541  ;;  %v269_v0 = vmul.f32 %v526_v35, %v268_v60  ;;  %v282_v1 = vsub.f32 %v538_v59, %v540_v61 }
  0x80   : > { %v544_v2 = vpop.eup %543  ;;  %v255_v3 = vmul.f32 %v534_v56, %v254_v62 }
  0x81   : > { %v283_v4 = vmul.f32 %v528_v38, %v282_v1  ;;  %v297_v5 = vsub.f32 %v542_v63, %v544_v2 }
  0x82   : > { %v300_v8 = vmul.f32 0.5, %v255_v3 }
  0x83   : > { %v284_v6 = vadd.f32 %v283_v4, %v269_v0  ;;  %v298_v7 = vmul.f32 %v530_v42, %v297_v5 }
  0x85   : > { %v299_v9 = vadd.f32 %v298_v7, %v284_v6 }
  0x87   : > { %v301_v10 = vmul.f32 %v300_v8, %v299_v9 }
  0x89   : > { %v302_v11 = vmax.f32 %v301_v10, 1e-06 }
  0x8b   : > { %303 = vst [vmem:[%s218_s21] sm:$0xff] %v302_v11 }
  0x8c   : > { %618 = shalt.err (!%p615_p2)
}
  0x8d   : > { %s619_s4 = scalar_lea.hbm %s904_s3, 128  ;;  %s623_s26 = scalar_lea.hbm %s953_s2, 256 }
  0x8e   : > { %p620_p9 = scmp.ne.s32.totalorder %s904_s3, %s619_s4  ;;  %p624_p6 = scmp.lt.u32.totalorder %s904_s3, %s953_s2 }
  0x8f   : > { %p625_p4 = scmp.lt.u32.totalorder %s623_s26, %s619_s4  ;;  %p627_p0 = scmp.lt.u32.totalorder %s619_s4, %s904_s3 }
  0x90   : > { %p621_p11 = pnand %p620_p9, %p965_p5 }
  0x91   : > { %p626_p8 = por %p625_p4, %p624_p6 }
  0x92   : > { %p622_p3 = pneg %p621_p11 }
  0x93   : > { %p628_p7 = por %p627_p0, %p626_p8 }
  0x95   : > { %p629_p13 = pnand %p628_p7, %p622_p3 }
  0x97   : > { %632 = shalt.err (!%p629_p13)
}
  0x98   : > { %454 = dma.vmem_to_hbm [thread:$0]  (%p965_p5), %s899_s16, 128, %s904_s3, %s305_s7  }
  0x99 PF: > { %s331_s5 = sand.u32 1, %s671_s9   ;;  %p966_p10 = scmp.ne.s32.totalorder %s959_s24, 0 }
  0x9a   : > { %p967_p12 = scmp.ge.s32.totalorder %s691_s14, 2  ;;  %s332_s29 = scalar_lea.sflag [#allocation4], %s331_s5 }
  0x9c   : > { %p464_p1 = pnand %p967_p12, %p966_p10 }
  0x9e   : > { %666 = dma.done.wait (!%p464_p1), %s332_s29, 128  }
  0x9f   : > { %668 = vsyncadd (!%p464_p1), %s332_s29, 4294967168  ;;  %s21_s14 = sadd.s32 1, %s691_s14   ;;  %s968_s9 = smov %s675_s10 }
  0xa0   : > { %p18_p2 = scmp.ge.s32.totalorder %s21_s14, 4   ;;  %s969_s10 = smov %s679_s11 }
  0xa1   : > { %s970_s11 = smov %s769_s23  ;;  %s971_s12 = smov %s687_s13 }
  0xa2   : > { %s972_s13 = smov %s974_s17  ;;  %20 = sbr.rel (!%p18_p2) target bundleno = 8 (0x8), region = 94 }
  0xa9   :  { %337 = vsyncpa [#allocation3], 1 }
  0xaa   :  { %339 = vsyncpa [#allocation3 + $0x1], 1 }
  0xab   :  { %340 = vsyncpa [#allocation6], 1 }
  0xac   :  { %342 = vsyncpa [#allocation6 + $0x1], 1 }
  0xad   :  { %343 = vsyncpa [#allocation4], 1 }
  0xae   :  { %345 = vsyncpa [#allocation4 + $0x1], 1 }

</bundles_post_ra>
